<compile_context>
chip_gen: v6e
topology: v6e:2x2x1
jax: 0.10.0
libtpu: 0.0.40
codegen_flags: <defaults>
</compile_context>

<pallas_src>
import jax
import jax.numpy as jnp
from jax.experimental import pallas as pl
from jax.experimental.pallas import tpu as pltpu


def _round_up(x, m):
    return ((x + m - 1) // m) * m


def _gamma_final_kernel(ls_ref, h_ref, dists_ref, o_ref, acc_ref):
    # grid = (n_params, P tiles, N tiles); N (reduction) is innermost.
    k = pl.program_id(0)          # parameter index: 0 = rho, 1 = alpha, 2 = beta
    n = pl.program_id(2)          # N-reduction step

    @pl.when(n == 0)
    def _init():
        acc_ref[...] = jnp.zeros_like(acc_ref)

    # ParamLayer: kernel = exp(-0.5 * dists / ls^2).
    # Keep the divide on the scalar unit: one scalar scale, one VPU multiply
    # per element, one EUP exp per element.
    ls = ls_ref[k]                                              # scalar from SMEM
    scale = -0.5 / (ls * ls)
    kern = jnp.exp(dists_ref[...] * scale)                      # (tN, tP)

    # einsum('bij,pij->bpij') + sum over (i,j)  ==  (B, tN) @ (tN, tP) on MXU.
    acc_ref[...] += jnp.dot(
        h_ref[...], kern,
        preferred_element_type=jnp.float32,
        precision=jax.lax.Precision.HIGHEST)                    # (B, tP)

    # Finalize: activation applied once per (k, p) output tile, gated on the
    # param index so the unused branch costs nothing.
    @pl.when(n == pl.num_programs(2) - 1)
    def _finalize():
        raw = acc_ref[...]

        @pl.when(k == 0)
        def _rho():
            # sigmoid + clamp(1e-5, 1 - 1e-5)
            o_ref[...] = jnp.clip(jax.nn.sigmoid(raw), 1e-5, 1.0 - 1e-5)

        @pl.when(k != 0)
        def _alpha_beta():
            # _force_positive = 0.01 + 0.9 * overflow-safe softplus, clamp(1e-5, 1e5)
            e = jnp.exp(raw)                                    # single exp, CSE'd
            soft = jnp.where(e < 1000.0, jnp.log1p(e), raw)
            o_ref[...] = jnp.clip(0.01 + (1.0 - 0.1) * soft, 1e-5, 1e5)


def gamma_final_layer(h, dists, length_scales, *, tile_n=1024, tile_p=512):
    """h: (B, I, J, 3) f32, dists: (P, I, J) f32, length_scales: (3,) f32.

    Returns (rho, alpha, beta), each of shape (B, P, 1) float32.
    """
    B, I, J, n_params = h.shape
    assert n_params == 3
    P = dists.shape[0]
    N = I * J

    # Lane-dense tiling: pad the last dims to multiples of 128 so exp/clip and
    # the output stores run on full vregs instead of masked lanes.
    tN = min(tile_n, _round_up(N, 128))
    tP = min(tile_p, _round_up(P, 128))
    N_pad = _round_up(N, tN)
    P_pad = _round_up(P, tP)

    # Glue: reshape/transpose/pad so the kernel sees contiguous MXU-friendly tiles.
    h_flat = jnp.transpose(h.reshape(B, N, n_params), (2, 0, 1))      # (3, B, N)
    h_flat = jnp.pad(h_flat, ((0, 0), (0, 0), (0, N_pad - N)))        # zero-pad N
    dists_t = dists.reshape(P, N).T                                   # (N, P)
    dists_t = jnp.pad(dists_t, ((0, N_pad - N), (0, P_pad - P)))      # pad N, P

    grid = (n_params, P_pad // tP, N_pad // tN)

    out = pl.pallas_call(
        _gamma_final_kernel,
        out_shape=jax.ShapeDtypeStruct((n_params, B, P_pad), jnp.float32),
        grid=grid,
        in_specs=[
            pl.BlockSpec(memory_space=pltpu.MemorySpace.SMEM),            # (3,) length scales
            pl.BlockSpec((None, B, tN), lambda k, p, n: (k, 0, n)),       # h tile for param k
            pl.BlockSpec((tN, tP), lambda k, p, n: (n, p)),               # RBF distance tile
        ],
        out_specs=pl.BlockSpec((None, B, tP), lambda k, p, n: (k, 0, p)),
        scratch_shapes=[pltpu.VMEM((B, tP), jnp.float32)],                # accumulator
        compiler_params=pltpu.CompilerParams(
            dimension_semantics=("parallel", "parallel", "arbitrary"),
            vmem_limit_bytes=32 * 1024 * 1024),
    )(length_scales, h_flat, dists_t)

    out = out[:, :, :P]                 # drop lane padding
    rho = out[0][..., None]             # (B, P, 1)
    alpha = out[1][..., None]           # (B, P, 1)
    beta = out[2][..., None]            # (B, P, 1)
    return rho, alpha, beta


def _reference(h, dists, ls):
    """Pure-JAX reference mirroring the PyTorch forward exactly."""
    params = []
    for k in range(3):
        kern = jnp.exp(-0.5 * dists / (ls[k] ** 2))              # (P, I, J)
        params.append(jnp.einsum('bij,pij->bp', h[..., k], kern,
                                 precision=jax.lax.Precision.HIGHEST))
    rho = jnp.clip(jax.nn.sigmoid(params[0]), 1e-5, 1.0 - 1e-5)[..., None]

    def force_positive(x):
        s = jnp.where(jnp.exp(x) < 1000.0, jnp.log1p(jnp.exp(x)), x)
        return 0.01 + (1.0 - 0.1) * s

    alpha = jnp.clip(force_positive(params[1]), 1e-5, 1e5)[..., None]
    beta = jnp.clip(force_positive(params[2]), 1e-5, 1e5)[..., None]
    return rho, alpha, beta


if __name__ == "__main__":
    key = jax.random.PRNGKey(0)
    k_h, k_d = jax.random.split(key)

    B, I, J, P = 2, 16, 16, 8   # batch, grid height, grid width, off-grid points
    init_ls = 0.5               # ParamLayer(init_ls) for each of the 3 param layers

    h = jax.random.normal(k_h, (B, I, J, 3), jnp.float32) * 0.1
    dists = jax.random.uniform(k_d, (P, I, J), jnp.float32, minval=0.0, maxval=4.0)
    length_scales = jnp.full((3,), init_ls, jnp.float32)  # deterministic param init

    rho, alpha, beta = gamma_final_layer(h, dists, length_scales)
    jax.block_until_ready((rho, alpha, beta))

    r_rho, r_alpha, r_beta = _reference(h, dists, length_scales)
    assert rho.shape == (B, P, 1) and alpha.shape == (B, P, 1) and beta.shape == (B, P, 1)
    assert jnp.allclose(rho, r_rho, rtol=1e-4, atol=1e-5)
    assert jnp.allclose(alpha, r_alpha, rtol=1e-4, atol=1e-5)
    assert jnp.allclose(beta, r_beta, rtol=1e-4, atol=1e-5)

    print("KERNEL_OK")
</pallas_src>

<mosaic_0001>
module attributes {stable_mosaic.version = 11 : i64} {
  func.func @_gamma_final_kernel(%arg0: i32, %arg1: i32, %arg2: i32, %arg3: memref<3xf32, #tpu.memory_space<smem>>, %arg4: memref<1x2x256xf32, #tpu.memory_space<vmem>>, %arg5: memref<256x128xf32, #tpu.memory_space<vmem>>, %arg6: memref<1x2x128xf32, #tpu.memory_space<vmem>>, %arg7: memref<2x128xf32, #tpu.memory_space<vmem>>) attributes {dimension_semantics = [#tpu.dimension_semantics<parallel>, #tpu.dimension_semantics<parallel>, #tpu.dimension_semantics<arbitrary>], iteration_bounds = array<i64: 3, 1, 1>, scalar_prefetch = 0 : i64, scratch_operands = 1 : i64, tpu.core_type = #tpu.core_type<tc>, window_params = [{transform_indices = @transform_0, window_bounds = array<i64: 3>}, {transform_indices = @transform_1, window_bounds = array<i64: 1, 2, 256>}, {transform_indices = @transform_2, window_bounds = array<i64: 256, 128>}, {transform_indices = @transform_3, window_bounds = array<i64: 1, 2, 128>}]} {
    %c0_i32 = arith.constant 0 : i32
    %0 = arith.cmpi eq, %arg2, %c0_i32 : i32
    %1 = arith.extui %0 : i1 to i32
    %c0_i32_0 = arith.constant 0 : i32
    %2 = arith.cmpi ne, %1, %c0_i32_0 : i32
    scf.if %2 {
      %cst_12 = arith.constant 0.000000e+00 : f32
      %20 = vector.broadcast %cst_12 : f32 to vector<2x128xf32>
      %c0_13 = arith.constant 0 : index
      %c0_14 = arith.constant 0 : index
      %21 = vector.load %arg7[%c0_13, %c0_14] : memref<2x128xf32, #tpu.memory_space<vmem>>, vector<2x128xf32>
      tpu.vector_store %arg7[%c0_13, %c0_14], %20 {strides = array<i32>} : memref<2x128xf32, #tpu.memory_space<vmem>>, vector<2x128xf32>,
    } else {
    }
    %3 = arith.index_cast %arg0 : i32 to index
    %4 = memref.load %arg3[%3] : memref<3xf32, #tpu.memory_space<smem>>
    %5 = arith.mulf %4, %4 : f32
    %cst = arith.constant -5.000000e-01 : f32
    %6 = arith.divf %cst, %5 : f32
    %c0 = arith.constant 0 : index
    %c0_1 = arith.constant 0 : index
    %7 = vector.load %arg5[%c0, %c0_1] : memref<256x128xf32, #tpu.memory_space<vmem>>, vector<256x128xf32>
    %8 = vector.broadcast %6 : f32 to vector<256x128xf32>
    %9 = arith.mulf %7, %8 : vector<256x128xf32>
    %10 = math.exp %9 : vector<256x128xf32>
    %c0_2 = arith.constant 0 : index
    %c0_3 = arith.constant 0 : index
    %11 = vector.load %arg7[%c0_2, %c0_3] : memref<2x128xf32, #tpu.memory_space<vmem>>, vector<2x128xf32>
    %c0_4 = arith.constant 0 : index
    %c0_5 = arith.constant 0 : index
    %c0_6 = arith.constant 0 : index
    %12 = vector.load %arg4[%c0_4, %c0_5, %c0_6] : memref<1x2x256xf32, #tpu.memory_space<vmem>>, vector<1x2x256xf32>
    %13 = vector.shape_cast %12 : vector<1x2x256xf32> to vector<2x256xf32>
    %cst_7 = arith.constant dense<0.000000e+00> : vector<2x128xf32>
    %14 = tpu.matmul %13, %10, %cst_7 {dimension_numbers = #tpu.dot_dimension_numbers<[1], [0], [0], [1], [0, 0, 1, 1], [], []>, precision = #tpu.contract_precision<fp32>} : vector<2x256xf32>, vector<256x128xf32>, vector<2x128xf32> -> vector<2x128xf32>
    %15 = arith.addf %11, %14 : vector<2x128xf32>
    %c0_8 = arith.constant 0 : index
    %c0_9 = arith.constant 0 : index
    %16 = vector.load %arg7[%c0_8, %c0_9] : memref<2x128xf32, #tpu.memory_space<vmem>>, vector<2x128xf32>
    tpu.vector_store %arg7[%c0_8, %c0_9], %15 {strides = array<i32>} : memref<2x128xf32, #tpu.memory_space<vmem>>, vector<2x128xf32>,
    %c0_i32_10 = arith.constant 0 : i32
    %17 = arith.cmpi eq, %arg2, %c0_i32_10 : i32
    %18 = arith.extui %17 : i1 to i32
    %c0_i32_11 = arith.constant 0 : i32
    %19 = arith.cmpi ne, %18, %c0_i32_11 : i32
    scf.if %19 {
      %c0_12 = arith.constant 0 : index
      %c0_13 = arith.constant 0 : index
      %20 = vector.load %arg7[%c0_12, %c0_13] : memref<2x128xf32, #tpu.memory_space<vmem>>, vector<2x128xf32>
      %c0_i32_14 = arith.constant 0 : i32
      %21 = arith.cmpi eq, %arg0, %c0_i32_14 : i32
      %22 = arith.extui %21 : i1 to i32
      %c0_i32_15 = arith.constant 0 : i32
      %23 = arith.cmpi ne, %22, %c0_i32_15 : i32
      scf.if %23 {
        %27 = arith.negf %20 : vector<2x128xf32>
        %28 = math.exp %27 : vector<2x128xf32>
        %cst_18 = arith.constant 1.000000e+00 : f32
        %29 = vector.broadcast %cst_18 : f32 to vector<2x128xf32>
        %30 = arith.addf %29, %28 : vector<2x128xf32>
        %31 = arith.divf %29, %30 : vector<2x128xf32>
        %cst_19 = arith.constant 9.99999974E-6 : f32
        %cst_20 = arith.constant 0.999989986 : f32
        %32 = vector.broadcast %cst_19 : f32 to vector<2x128xf32>
        %33 = arith.maximumf %32, %31 : vector<2x128xf32>
        %34 = vector.broadcast %cst_20 : f32 to vector<2x128xf32>
        %35 = arith.minimumf %34, %33 : vector<2x128xf32>
        %c0_21 = arith.constant 0 : index
        %c0_22 = arith.constant 0 : index
        %c0_23 = arith.constant 0 : index
        %36 = vector.load %arg6[%c0_21, %c0_22, %c0_23] : memref<1x2x128xf32, #tpu.memory_space<vmem>>, vector<1x2x128xf32>
        %37 = vector.shape_cast %36 : vector<1x2x128xf32> to vector<2x128xf32>
        %38 = vector.shape_cast %35 : vector<2x128xf32> to vector<1x2x128xf32>
        tpu.vector_store %arg6[%c0_21, %c0_22, %c0_23], %38 {strides = array<i32>} : memref<1x2x128xf32, #tpu.memory_space<vmem>>, vector<1x2x128xf32>,
      } else {
      }
      %c0_i32_16 = arith.constant 0 : i32
      %24 = arith.cmpi ne, %arg0, %c0_i32_16 : i32
      %25 = arith.extui %24 : i1 to i32
      %c0_i32_17 = arith.constant 0 : i32
      %26 = arith.cmpi ne, %25, %c0_i32_17 : i32
      scf.if %26 {
        %27 = math.exp %20 : vector<2x128xf32>
        %cst_18 = arith.constant 1.000000e+03 : f32
        %28 = vector.broadcast %cst_18 : f32 to vector<2x128xf32>
        %29 = arith.cmpf olt, %27, %28 : vector<2x128xf32>
        %30 = math.log1p %27 : vector<2x128xf32>
        %31 = arith.select %29, %30, %20 : vector<2x128xi1>, vector<2x128xf32>
        %cst_19 = arith.constant 0.899999976 : f32
        %32 = vector.broadcast %cst_19 : f32 to vector<2x128xf32>
        %33 = arith.mulf %32, %31 : vector<2x128xf32>
        %cst_20 = arith.constant 0.00999999977 : f32
        %34 = vector.broadcast %cst_20 : f32 to vector<2x128xf32>
        %35 = arith.addf %34, %33 : vector<2x128xf32>
        %cst_21 = arith.constant 9.99999974E-6 : f32
        %cst_22 = arith.constant 1.000000e+05 : f32
        %36 = vector.broadcast %cst_21 : f32 to vector<2x128xf32>
        %37 = arith.maximumf %36, %35 : vector<2x128xf32>
        %38 = vector.broadcast %cst_22 : f32 to vector<2x128xf32>
        %39 = arith.minimumf %38, %37 : vector<2x128xf32>
        %c0_23 = arith.constant 0 : index
        %c0_24 = arith.constant 0 : index
        %c0_25 = arith.constant 0 : index
        %40 = vector.load %arg6[%c0_23, %c0_24, %c0_25] : memref<1x2x128xf32, #tpu.memory_space<vmem>>, vector<1x2x128xf32>
        %41 = vector.shape_cast %40 : vector<1x2x128xf32> to vector<2x128xf32>
        %42 = vector.shape_cast %39 : vector<2x128xf32> to vector<1x2x128xf32>
        tpu.vector_store %arg6[%c0_23, %c0_24, %c0_25], %42 {strides = array<i32>} : memref<1x2x128xf32, #tpu.memory_space<vmem>>, vector<1x2x128xf32>,
      } else {
      }
    } else {
    }
    return
  }
  func.func @transform_0(%arg0: i32, %arg1: i32, %arg2: i32) -> i32 {
    %c0_i32 = arith.constant 0 : i32
    %c0_i32_0 = arith.constant 0 : i32
    return %c0_i32 : i32
  }
  func.func @transform_1(%arg0: i32, %arg1: i32, %arg2: i32) -> (i32, i32, i32) {
    %c0_i32 = arith.constant 0 : i32
    %c0_i32_0 = arith.constant 0 : i32
    return %arg0, %c0_i32, %arg2 : i32, i32, i32
  }
  func.func @transform_2(%arg0: i32, %arg1: i32, %arg2: i32) -> (i32, i32) {
    %c0_i32 = arith.constant 0 : i32
    return %arg2, %arg1 : i32, i32
  }
  func.func @transform_3(%arg0: i32, %arg1: i32, %arg2: i32) -> (i32, i32, i32) {
    %c0_i32 = arith.constant 0 : i32
    %c0_i32_0 = arith.constant 0 : i32
    return %arg0, %c0_i32, %arg1 : i32, i32, i32
  }
}

</mosaic_0001>

<bundles_post_ra>
// kernel: tpu_custom_call.1
= control target key start
LH: loop header
LB: loop body
LE: loop exit
PB: predicated region body
PF: predicated region fallthrough
CT: control target
= control target key end

     0   :  { %8 = vsyncpa [#allocation6], 0  ;;  %s2775_s0 = inlined_call_operand.hbm [shape: f32[3], index: 0, kind: input, shape index: {}]   ;;  %s2776_s1 = inlined_call_operand.hbm [shape: f32[3,2,256], index: 1, kind: input, shape index: {}]   ;;  %s2777_s2 = inlined_call_operand.hbm [shape: f32[256,128], index: 2, kind: input, shape index: {}]   ;;  %s2778_s3 = inlined_call_operand.hbm [shape: f32[3,2,128], index: 3, kind: output, shape index: {}]  }
   0x1   :  { %9 = vsyncpa [#allocation4], 0 }
   0x2   :  { %11 = vsyncpa [#allocation4 + $0x1], 0 }
   0x3   :  { %12 = vsyncpa [#allocation9], 0 }
   0x4   :  { %13 = vsyncpa [#allocation5], 0 }
   0x5   :  { %15 = vsyncpa [#allocation5 + $0x1], 0  ;;  %s2011_s12 = smov 0   ;;  %s2013_s13 = smov 0  }
   0x6   :  { %s2015_s14 = smov 0   ;;  %s2017_s15 = smov 0  }
   0x7   :  { %s2019_s16 = smov 0   ;;  %s2021_s17 = smov 0  }
   0x8 LB: > { %s1434_s18 = sadd.s32 4294967295, %s1982_s17   ;;  %s1435_s19 = sadd.s32 4294967294, %s1982_s17   ;;  %s1982_s17 = sphi %s2021_s17, %s21_s17   ;;  %s1978_s16 = sphi %s2019_s16, %s2938_s16   ;;  %s1974_s15 = sphi %s2017_s15, %s2937_s15   ;;  %s1970_s14 = sphi %s2015_s14, %s2936_s14   ;;  %s1966_s13 = sphi %s2013_s13, %s2935_s13   ;;  %s1962_s12 = sphi %s2011_s12, %s2934_s12  }
   0x9   : > { %p83_p0 = scmp.ne.s32.totalorder %s1966_s13, %s1962_s12  ;;  %p2045_p1 = scmp.eq.s32.totalorder %s1434_s18, 0 }
   0xa   : > { %p2049_p2 = scmp.eq.s32.totalorder %s1434_s18, 2  ;;  %p143_p3 = scmp.eq.s32.totalorder %s1435_s19, 2 }
   0xb   : > { %p2055_p4 = por %p2045_p1, %p83_p0  ;;  %p1436_p5 = scmp.ge.s32.totalorder %s1982_s17, 1 }
   0xc   : > { %p2060_p6 = por %p143_p3, %p83_p0  ;;  %p150_p7 = scmp.lt.s32.totalorder %s1982_s17, 4 }
   0xd   : > { %s1984_s25 = smov [#allocation8]   ;;  %s1985_s28 = smov [#allocation3]  }
   0xe   : > { %s2851_s23 = scalar_select %p2060_p6, 1, 0 }
   0xf   : > { %p2065_p8 = pnand %p1436_p5, %p150_p7  ;;  %s175_s26 = sshll.u32 %s1984_s25, 4  ;;  %s176_s26 = int_to_ptr.vmem [resolvable:$true] %s175_s26 }
  0x10   : > { %s1851_s4 = scalar_lea.vmem %s176_s26, 4096  ;;  %p1859_p3 = scmp.lt.s32.totalorder %s176_s26, %s176_s26 }
  0x11   : > { %p1681_p9 = pneg %p2065_p8  ;;  %p1852_p12 = scmp.ne.s32.totalorder %s176_s26, %s1851_s4 }
  0x12   : > { %p1860_p5 = scmp.lt.s32.totalorder %s1851_s4, %s1851_s4 }
  0x13   : > { %p2073_p10 = pnand %p1681_p9, %p2045_p1 }
  0x14   : > { %p1861_p7 = por %p1860_p5, %p1859_p3 }
  0x15   : > { %1684 = dma.hbm_to_smem (!%p2073_p10), %s2775_s0, 16, %s1985_s28, [#allocation6]  }
  0x16   : > { %p1842_p11 = pneg %p2073_p10 }
  0x18   : > { %p1854_p13 = pnand %p1852_p12, %p1842_p11 }
  0x1a   : > { %p1855_p0 = pneg %p1854_p13 }
  0x1c   : > { %p1862_p9 = pnand %p1861_p7, %p1855_p0 }
  0x1e   : > { %1865 = shalt.err (!%p1862_p9)
}
  0x1f   : > { %s1986_s5 = smov 128   ;;  %s1987_s6 = smov 8  }
  0x20   : > { %1687 = dma.hbm_to_vmem [thread:$0]  (!%p2073_p10), %s2777_s2, 4096, %s176_s26, [#allocation9], %s1986_s5, %s1986_s5, %s1987_s6  }
  0x21   : > { %s40_s9 = sadd.s32 1, %s1978_s16  ;;  %s70_s10 = sadd.s32 1, %s1970_s14 }
  0x22   : > { %p42_p11 = scmp.ge.s32.totalorder %s40_s9, 3  ;;  %p77_p12 = scmp.ne.s32.totalorder %s1970_s14, %s1966_s13 }
  0x23   : > { %p78_p13 = scmp.eq.s32.totalorder %s1982_s17, 0  ;;  %p1698_p0 = scmp.lt.s32.totalorder %s1982_s17, 3 }
  0x24   : > { %s2940_s9 = smov (%p42_p11, %s40_s9), 0  ;;  %p2099_p5 = por %p2049_p2, %p77_p12 }
  0x25   : > { %p79_p3 = por %p78_p13, %p77_p12  ;;  %s65_s18 = ssub.s32 %s1978_s16, %s2940_s9 }
  0x26   : > { %s189_s19 = sand.u32 1, %s1970_s14   ;;  %p68_p7 = scmp.eq.s32.totalorder %s65_s18, 0 }
  0x27   : > { %s1440_s25 = sshll.u32 %s189_s19, 2  ;;  %s1456_s26 = sshll.u32 %s1978_s16, 6 }
  0x28   : > { %s2108_s27 = scalar_select %p68_p7, %s1970_s14, %s70_s10  }
  0x29   : > { %s201_s30 = scalar_lea.hbm %s2776_s1, %s1456_s26  ;;  %s193_s4 = scalar_lea.vmem [#allocation7], %s1440_s25 }
  0x2a   : > { %s203_s5 = sshll.u32 %s193_s4, 4  ;;  %p2115_p10 = pnand %p1698_p0, %p79_p3  ;;  %s204_s5 = int_to_ptr.vmem [resolvable:$true] %s203_s5 }
  0x2b   : > { %s190_s6 = scalar_lea.sflag [#allocation4], %s189_s19  ;;  %s1879_s7 = scalar_lea.vmem %s204_s5, 64 }
  0x2c   : > { %p1868_p2 = pneg %p2115_p10  ;;  %p1880_p9 = scmp.ne.s32.totalorder %s204_s5, %s1879_s7 }
  0x2d   : > { %s1988_s8 = smov [#allocation7]  }
  0x2e   : > { %p1882_p11 = pnand %p1880_p9, %p1868_p2  ;;  %s1884_s10 = sshll.u32 %s1988_s8, 4  ;;  %s1885_s10 = int_to_ptr.vmem [resolvable:$false] %s1884_s10 }
  0x2f   : > { %s1886_s18 = scalar_lea.vmem %s1885_s10, 128  ;;  %p1887_p13 = scmp.lt.s32.totalorder %s204_s5, %s1885_s10 }
  0x30   : > { %p1883_p12 = pneg %p1882_p11  ;;  %p1888_p7 = scmp.lt.s32.totalorder %s1886_s18, %s1879_s7 }
  0x32   : > { %p1889_p6 = por %p1888_p7, %p1887_p13 }
  0x34   : > { %p1890_p0 = pnand %p1889_p6, %p1883_p12 }
  0x36   : > { %1893 = shalt.err (!%p1890_p0)
}
  0x37   : > { %1691 = dma.hbm_to_vmem [thread:$0]  (!%p2115_p10), %s201_s30, 64, %s204_s5, %s190_s6  }
  0x38   : > { %212 = sbr.rel (%p2065_p8) target bundleno = 608 (0x260), region = 32 }
  0x3d   : > { %1945 = dma.done.wait (%p2045_p1), [#allocation6], 16  }
  0x3e   : > { %1947 = vsyncadd (%p2045_p1), [#allocation6], 4294967280  ;;  %s2130_s19 = sand.u32 1, %s1966_s13  }
  0x3f   : > { %s1445_s25 = sshll.u32 %s2130_s19, 2  ;;  %s219_s26 = scalar_lea.sflag [#allocation4], %s2130_s19 }
  0x40   : > { %s222_s28 = scalar_lea.vmem [#allocation7], %s1445_s25 }
  0x41   : > { %1949 = dma.done.wait (%p2055_p4), %s219_s26, 64  }
  0x42   : > { %1951 = vsyncadd (%p2055_p4), %s219_s26, 4294967232 }
  0x43   : > { %1953 = dma.done.wait (%p2045_p1), [#allocation9], 4096  }
  0x44   : > { %1955 = vsyncadd (%p2045_p1), [#allocation9], 4294963200 }
  0x45   : > { %231 = sfence }
  0x46   : > { %s1447_s24 = sshll.u32 %s2130_s19, 1  ;;  %s257_s29 = sld [smem:[#allocation3 + %s1974_s15]]  ;;  %v1448_v1 = vld.sshfl [vmem:[%s222_s28] sm:$0x33 pattern:$0x76325410] }
  0x47   : > { %v402_v2 = vcombine.high %v1448_v1, %v1448_v1  ;;  %v294_v9 = vld [vmem:[#allocation8 + $0xf8] sm:$0xff]  ;;  %v293_v11 = vld [vmem:[#allocation8 + $0xf0] sm:$0xff]  ;;  %v292_v13 = vld [vmem:[#allocation8 + $0xe8] sm:$0xff]  ;;  %v2156_v19 = vand.u32 4294901760, %v1448_v1  ;;  %s2729_s4 = scalar_lea.vmem [#allocation10], %s1447_s24  ;;  %p1449_p1 = scmp.ne.s32.totalorder %s1974_s15, 0 }
  0x48   : > { %v278_v10 = vld [vmem:[#allocation8 + $0x78] sm:$0xff]  ;;  %v277_v12 = vld [vmem:[#allocation8 + $0x70] sm:$0xff]  ;;  %v276_v14 = vld [vmem:[#allocation8 + $0x68] sm:$0xff] }
  0x49   : > { %v2144_v3 = vand.u32 4294901760, %v402_v2  ;;  %v291_v15 = vld [vmem:[#allocation8 + $0xe0] sm:$0xff]  ;;  %v290_v18 = vld [vmem:[#allocation8 + $0xd8] sm:$0xff]  ;;  %2857 = vst [vmem:[#allocation16_spill] sm:$0xff] %v2156_v19  ;;  %v289_v25 = vld [vmem:[#allocation8 + $0xd0] sm:$0xff]  ;;  %v2169_v42 = vsub.f32 %v1448_v1, %v2156_v19 }
  0x4a   : > { %v275_v16 = vld [vmem:[#allocation8 + $0x60] sm:$0xff]  ;;  %v274_v24 = vld [vmem:[#allocation8 + $0x58] sm:$0xff]  ;;  %v273_v30 = vld [vmem:[#allocation8 + $0x50] sm:$0xff] }
  0x4b   : > { %2856 = vst [vmem:[#allocation15_spill] sm:$0xff] %v2144_v3  ;;  %v2147_v4 = vsub.f32 %v402_v2, %v2144_v3  ;;  %742 = vmatprep.mubr.f32.mxu1 %v2144_v3  ;;  %v288_v31 = vld [vmem:[#allocation8 + $0xc8] sm:$0xff]  ;;  %v287_v40 = vld [vmem:[#allocation8 + $0xc0] sm:$0xff]  ;;  %2858 = vst [vmem:[#allocation17_spill] sm:$0xff] %v2169_v42 }
  0x4c   : > { %s258_s30 = smul.f32 %s257_s29, %s257_s29  ;;  %v272_v32 = vld [vmem:[#allocation8 + $0x48] sm:$0xff]  ;;  %v271_v41 = vld [vmem:[#allocation8 + $0x40] sm:$0xff]  ;;  %v286_v49 = vld [vmem:[#allocation8 + $0xb8] sm:$0xff] }
  0x4d   : > { %v2779_v5 = vand.u32 4294901760, %v2147_v4  ;;  %v270_v53 = vld [vmem:[#allocation8 + $0x38] sm:$0xff]  ;;  %v285_v54 = vld [vmem:[#allocation8 + $0xb0] sm:$0xff]  ;;  %v284_v59 = vld [vmem:[#allocation8 + $0xa8] sm:$0xff] }
  0x4e   : > { %v259_v0 = vstv %s258_s30  ;;  %v269_v55 = vld [vmem:[#allocation8 + $0x30] sm:$0xff]  ;;  %v268_v60 = vld [vmem:[#allocation8 + $0x28] sm:$0xff] }
  0x4f   : > { %1755 = vrcp.f32 %v259_v0  ;;  %v504_v7 = vsub.f32 %v2147_v4, %v2779_v5 }
  0x51   : > { %v505_v8 = vand.u32 4294901760, %v504_v7 }
  0x53   : > { %506 = vmatprep.mubr.f32.mxu0 %v505_v8 }
  0x5c   : > { %v1756_v6 = vpop.eup %1755 }
  0x5d   : > { %1667 = vpush %v1756_v6  ;;  %v283_v6 = vld [vmem:[#allocation8 + $0xa0] sm:$0xff] }
  0x8e   : > { %s1668_s20 = spop %1667 }
  0x8f   : > { %s262_s22 = smul.f32 -0.5, %s1668_s20 }
  0x91   : > { %v2154_v17 = vstv %s262_s22 }
  0x92   : > { %v327_v20 = vmul.f32 %v2154_v17, %v294_v9  ;;  %v311_v21 = vmul.f32 %v2154_v17, %v278_v10  ;;  %v326_v22 = vmul.f32 %v2154_v17, %v293_v11  ;;  %v310_v23 = vmul.f32 %v2154_v17, %v277_v12  ;;  %v267_v10 = vld [vmem:[#allocation8 + $0x20] sm:$0xff]  ;;  %v282_v11 = vld [vmem:[#allocation8 + $0x98] sm:$0xff] }
  0x93   : > { %v325_v26 = vmul.f32 %v2154_v17, %v292_v13  ;;  %v309_v27 = vmul.f32 %v2154_v17, %v276_v14  ;;  %v324_v28 = vmul.f32 %v2154_v17, %v291_v15  ;;  %v308_v29 = vmul.f32 %v2154_v17, %v275_v16  ;;  %v266_v12 = vld [vmem:[#allocation8 + $0x18] sm:$0xff]  ;;  %v281_v16 = vld [vmem:[#allocation8 + $0x90] sm:$0xff] }
  0x94   : > { %v390_v33 = vmul.f32 1.442695, %v327_v20  ;;  %v358_v34 = vmul.f32 1.442695, %v311_v21  ;;  %v388_v35 = vmul.f32 1.442695, %v326_v22  ;;  %v323_v36 = vmul.f32 %v2154_v17, %v290_v18 }
  0x95   : > { %v356_v37 = vmul.f32 1.442695, %v310_v23  ;;  %v386_v38 = vmul.f32 1.442695, %v325_v26  ;;  %v307_v39 = vmul.f32 %v2154_v17, %v274_v24  ;;  %v354_v43 = vmul.f32 1.442695, %v309_v27 }
  0x96   : > { %1757 = vpow2.f32 %v390_v33  ;;  %v384_v44 = vmul.f32 1.442695, %v324_v28  ;;  %v352_v45 = vmul.f32 1.442695, %v308_v29  ;;  %v382_v46 = vmul.f32 1.442695, %v323_v36 }
  0x97   : > { %1759 = vpow2.f32 %v358_v34  ;;  %v322_v47 = vmul.f32 %v2154_v17, %v289_v25  ;;  %v306_v48 = vmul.f32 %v2154_v17, %v273_v30  ;;  %v321_v50 = vmul.f32 %v2154_v17, %v288_v31  ;;  %v265_v18 = vld [vmem:[#allocation8 + $0x10] sm:$0xff]  ;;  %v280_v29 = vld [vmem:[#allocation8 + $0x88] sm:$0xff]  ;;  %v279_v34 = vld [vmem:[#allocation8 + $0x80] sm:$0xff] }
  0x98   : > { %1761 = vpow2.f32 %v388_v35  ;;  %v305_v51 = vmul.f32 %v2154_v17, %v272_v32  ;;  %v320_v52 = vmul.f32 %v2154_v17, %v287_v40  ;;  %v350_v56 = vmul.f32 1.442695, %v307_v39  ;;  %v264_v30 = vld [vmem:[#allocation8 + $0x8] sm:$0xff]  ;;  %v263_v35 = vld [vmem:[#allocation8] sm:$0xff] }
  0x99   : > { %1763 = vpow2.f32 %v356_v37  ;;  %v380_v57 = vmul.f32 1.442695, %v322_v47  ;;  %v304_v58 = vmul.f32 %v2154_v17, %v271_v41  ;;  %v348_v61 = vmul.f32 1.442695, %v306_v48 }
  0x9a   : > { %1765 = vpow2.f32 %v386_v38  ;;  %v378_v62 = vmul.f32 1.442695, %v321_v50  ;;  %v346_v63 = vmul.f32 1.442695, %v305_v51  ;;  %v376_v0 = vmul.f32 1.442695, %v320_v52 }
  0x9b   : > { %1767 = vpow2.f32 %v354_v43  ;;  %v319_v1 = vmul.f32 %v2154_v17, %v286_v49  ;;  %v303_v2 = vmul.f32 %v2154_v17, %v270_v53  ;;  %v318_v7 = vmul.f32 %v2154_v17, %v285_v54 }
  0x9c   : > { %1769 = vpow2.f32 %v384_v44  ;;  %v302_v8 = vmul.f32 %v2154_v17, %v269_v55  ;;  %v317_v9 = vmul.f32 %v2154_v17, %v284_v59  ;;  %v344_v13 = vmul.f32 1.442695, %v304_v58 }
  0x9d   : > { %1771 = vpow2.f32 %v352_v45  ;;  %v374_v14 = vmul.f32 1.442695, %v319_v1  ;;  %v301_v15 = vmul.f32 %v2154_v17, %v268_v60  ;;  %v342_v20 = vmul.f32 1.442695, %v303_v2 }
  0x9e   : > { %1773 = vpow2.f32 %v382_v46  ;;  %v372_v21 = vmul.f32 1.442695, %v318_v7  ;;  %v340_v22 = vmul.f32 1.442695, %v302_v8  ;;  %v2183_v23 = vmul.f32 1.442695, %v317_v9 }
  0x9f   : > { %1775 = vpow2.f32 %v350_v56  ;;  %v316_v24 = vmul.f32 %v2154_v17, %v283_v6  ;;  %v300_v25 = vmul.f32 %v2154_v17, %v267_v10  ;;  %v315_v26 = vmul.f32 %v2154_v17, %v282_v11 }
  0xa0   : > { %1777 = vpow2.f32 %v380_v57  ;;  %v299_v27 = vmul.f32 %v2154_v17, %v266_v12  ;;  %v314_v28 = vmul.f32 %v2154_v17, %v281_v16  ;;  %v2190_v31 = vmul.f32 1.442695, %v301_v15 }
  0xa1   : > { %1779 = vpow2.f32 %v348_v61  ;;  %v2192_v32 = vmul.f32 1.442695, %v316_v24  ;;  %v298_v33 = vmul.f32 %v2154_v17, %v265_v18  ;;  %v2195_v36 = vmul.f32 1.442695, %v300_v25 }
  0xa2   : > { %1781 = vpow2.f32 %v378_v62  ;;  %v2197_v37 = vmul.f32 1.442695, %v315_v26  ;;  %v2199_v38 = vmul.f32 1.442695, %v299_v27  ;;  %v2201_v40 = vmul.f32 1.442695, %v314_v28 }
  0xa3   : > { %v1758_v39 = vpop.eup %1757  ;;  %1783 = vpow2.f32 %v346_v63  ;;  %v313_v41 = vmul.f32 %v2154_v17, %v280_v29  ;;  %v297_v43 = vmul.f32 %v2154_v17, %v264_v30  ;;  %v2207_v46 = vmul.f32 1.442695, %v298_v33 }
  0xa4   : > { %v1760_v44 = vpop.eup %1759  ;;  %v2205_v45 = vand.u32 4294901760, %v1758_v39  ;;  %1785 = vpow2.f32 %v376_v0  ;;  %v312_v47 = vmul.f32 %v2154_v17, %v279_v34  ;;  %v2215_v51 = vmul.f32 %v2154_v17, %v263_v35 }
  0xa5   : > { %v1762_v48 = vpop.eup %1761  ;;  %v2210_v49 = vand.u32 4294901760, %v1760_v44  ;;  %1787 = vpow2.f32 %v344_v13  ;;  %v2212_v50 = vmul.f32 1.442695, %v313_v41  ;;  %v2223_v55 = vmul.f32 1.442695, %v297_v43 }
  0xa6   : > { %v1764_v52 = vpop.eup %1763  ;;  %1457 = vmatprep.subr.mxu0 %v2205_v45  ;;  %v2218_v53 = vand.u32 4294901760, %v1762_v48  ;;  %v2221_v54 = vsub.f32 %v1758_v39, %v2205_v45  ;;  %1789 = vpow2.f32 %v374_v14  ;;  %v2231_v17 = vmul.f32 1.442695, %v312_v47 }
  0xa7   : > { %v1766_v56 = vpop.eup %1765  ;;  %1458 = vmatpush3.msra.mxu0 %v2210_v49  ;;  %v2226_v57 = vand.u32 4294901760, %v1764_v52  ;;  %v2229_v58 = vsub.f32 %v1760_v44, %v2210_v49  ;;  %1791 = vpow2.f32 %v342_v20 }
  0xa8   : > { %v1768_v59 = vpop.eup %1767  ;;  %1459 = vmatprep.subr.mxu0 %v2218_v53  ;;  %v2234_v60 = vand.u32 4294901760, %v1766_v56  ;;  %v2787_v61 = vand.u32 4294901760, %v2221_v54  ;;  %v2238_v62 = vsub.f32 %v1762_v48, %v2218_v53  ;;  %1793 = vpow2.f32 %v372_v21 }
  0xa9   : > { %v1770_v63 = vpop.eup %1769  ;;  %1460 = vmatpush3.msra.mxu0 %v2226_v57  ;;  %v2241_v0 = vand.u32 4294901760, %v1768_v59  ;;  %v2786_v1 = vand.u32 4294901760, %v2229_v58  ;;  %v2245_v2 = vsub.f32 %v1764_v52, %v2226_v57  ;;  %1795 = vpow2.f32 %v340_v22 }
  0xaa   : > { %v1772_v6 = vpop.eup %1771  ;;  %1461 = vmatprep.subr.mxu0 %v2234_v60  ;;  %v2248_v7 = vand.u32 4294901760, %v1770_v63  ;;  %v633_v8 = vsub.f32 %v2221_v54, %v2787_v61  ;;  %v2785_v9 = vand.u32 4294901760, %v2238_v62  ;;  %v2255_v10 = vsub.f32 %v1766_v56, %v2234_v60 }
  0xab   : > { %v1774_v11 = vpop.eup %1773  ;;  %1462 = vmatpush3.msra.mxu0 %v2241_v0  ;;  %v2258_v12 = vand.u32 4294901760, %v1772_v6  ;;  %v521_v13 = vsub.f32 %v2229_v58, %v2786_v1  ;;  %v2783_v14 = vand.u32 4294901760, %v2245_v2  ;;  %v2265_v15 = vsub.f32 %v1768_v59, %v2241_v0 }
  0xac   : > { %v1776_v16 = vpop.eup %1775  ;;  %1463 = vmatprep.subr.mxu0 %v2248_v7  ;;  %v2268_v18 = vand.u32 4294901760, %v1774_v11  ;;  %v634_v20 = vand.u32 4294901760, %v633_v8  ;;  %v640_v21 = vsub.f32 %v2238_v62, %v2785_v9  ;;  %v2782_v22 = vand.u32 4294901760, %v2255_v10 }
  0xad   : > { %v1778_v24 = vpop.eup %1777  ;;  %1464 = vmatpush3.msra.mxu0 %v2258_v12  ;;  %v2275_v25 = vand.u32 4294901760, %v1776_v16  ;;  %v522_v26 = vand.u32 4294901760, %v521_v13  ;;  %v528_v27 = vsub.f32 %v2245_v2, %v2783_v14  ;;  %v2781_v28 = vand.u32 4294901760, %v2265_v15 }
  0xae   : > { %v1780_v29 = vpop.eup %1779  ;;  %1465 = vmatprep.subr.mxu0 %v2268_v18  ;;  %1492 = vmatprep.subr.mxu1 %v634_v20  ;;  %v2282_v30 = vand.u32 4294901760, %v1778_v24  ;;  %v641_v33 = vand.u32 4294901760, %v640_v21  ;;  %v647_v34 = vsub.f32 %v2255_v10, %v2782_v22  ;;  %v2288_v35 = vsub.f32 %v1770_v63, %v2248_v7 }
  0xaf   : > { %v1782_v39 = vpop.eup %1781  ;;  %1466 = vmatpush3.msra.mxu0 %v2275_v25  ;;  %1493 = vmatpush3.msra.mxu1 %v522_v26  ;;  %v2291_v41 = vand.u32 4294901760, %v1780_v29  ;;  %v529_v43 = vand.u32 4294901760, %v528_v27  ;;  %v535_v44 = vsub.f32 %v2265_v15, %v2781_v28  ;;  %v2297_v47 = vsub.f32 %v1772_v6, %v2258_v12 }
  0xb0   : > { %v1784_v48 = vpop.eup %1783  ;;  %1467 = vmatprep.subr.mxu0 %v2282_v30  ;;  %1494 = vmatprep.subr.mxu1 %v641_v33  ;;  %v2300_v52 = vand.u32 4294901760, %v1782_v39  ;;  %v648_v56 = vand.u32 4294901760, %v647_v34  ;;  %v2780_v59 = vand.u32 4294901760, %v2288_v35  ;;  %v2304_v63 = vsub.f32 %v1774_v11, %v2268_v18 }
  0xb1   : > { %2859 = vst [vmem:[#allocation18_spill] sm:$0xff] %v2291_v41  ;;  %v1786_v8 = vpop.eup %1785  ;;  %1468 = vmatpush3.msra.mxu0 %v2291_v41  ;;  %1495 = vmatpush3.msra.mxu1 %v529_v43  ;;  %v2307_v13 = vand.u32 4294901760, %v1784_v48  ;;  %v536_v6 = vand.u32 4294901760, %v535_v44  ;;  %v2784_v20 = vand.u32 4294901760, %v2297_v47  ;;  %v2311_v21 = vsub.f32 %v1776_v16, %v2275_v25 }
  0xb2   : > { %v1788_v26 = vpop.eup %1787  ;;  %1469 = vmatprep.subr.mxu0 %v2300_v52  ;;  %1496 = vmatprep.subr.mxu1 %v648_v56  ;;  %v2314_v27 = vand.u32 4294901760, %v1786_v8  ;;  %v654_v11 = vsub.f32 %v2288_v35, %v2780_v59  ;;  %v2788_v33 = vand.u32 4294901760, %v2304_v63  ;;  %v2321_v34 = vsub.f32 %v1778_v24, %v2282_v30 }
  0xb3   : > { %v1790_v43 = vpop.eup %1789  ;;  %1470 = vmatpush3.msra.mxu0 %v2307_v13  ;;  %1497 = vmatpush3.msra.mxu1 %v536_v6  ;;  %v2324_v16 = vand.u32 4294901760, %v1788_v26  ;;  %v542_v44 = vsub.f32 %v2297_v47, %v2784_v20  ;;  %v2791_v56 = vand.u32 4294901760, %v2311_v21  ;;  %v2331_v5 = vsub.f32 %v1780_v29, %v2291_v41 }
  0xb4   : > { %v1792_v59 = vpop.eup %1791  ;;  %1471 = vmatprep.subr.mxu0 %v2314_v27  ;;  %v655_v24 = vand.u32 4294901760, %v654_v11  ;;  %v2334_v28 = vand.u32 4294901760, %v1790_v43  ;;  %v661_v6 = vsub.f32 %v2304_v63, %v2788_v33  ;;  %v2803_v22 = vand.u32 4294901760, %v2321_v34 }
  0xb5   : > { %2860 = vst [vmem:[#allocation19_spill] sm:$0xff] %v2324_v16  ;;  %v1794_v14 = vpop.eup %1793  ;;  %1472 = vmatpush3.msra.mxu0 %v2324_v16  ;;  %v543_v20 = vand.u32 4294901760, %v542_v44  ;;  %v2341_v9 = vand.u32 4294901760, %v1792_v59  ;;  %v549_v29 = vsub.f32 %v2311_v21, %v2791_v56  ;;  %v2794_v11 = vand.u32 4294901760, %v2331_v5 }
  0xb6   : > { %2861 = vst [vmem:[#allocation20_spill] sm:$0xff] %v2334_v28  ;;  %v1796_v1 = vpop.eup %1795  ;;  %1498 = vmatprep.subr.mxu1 %v655_v24  ;;  %1473 = vmatprep.subr.mxu0 %v2334_v28  ;;  %v662_v61 = vand.u32 4294901760, %v661_v6  ;;  %v2348_v33 = vand.u32 4294901760, %v1794_v14  ;;  %v668_v3 = vsub.f32 %v2321_v34, %v2803_v22  ;;  %1797 = vpow2.f32 %v2183_v23 }
  0xb7   : > { %2862 = vst [vmem:[#allocation21_spill] sm:$0xff] %v2341_v9  ;;  %1499 = vmatpush3.msra.mxu1 %v543_v20  ;;  %1474 = vmatpush3.msra.mxu0 %v2341_v9  ;;  %v550_v44 = vand.u32 4294901760, %v549_v29  ;;  %v2355_v56 = vand.u32 4294901760, %v1796_v1  ;;  %v556_v24 = vsub.f32 %v2331_v5, %v2794_v11  ;;  %v2361_v6 = vsub.f32 %v1782_v39, %v2300_v52 }
  0xb8   : > { %2863 = vst [vmem:[#allocation22_spill] sm:$0xff] %v2348_v33  ;;  %1500 = vmatprep.subr.mxu1 %v662_v61  ;;  %1475 = vmatprep.subr.mxu0 %v2348_v33  ;;  %v669_v41 = vand.u32 4294901760, %v668_v3  ;;  %1799 = vpow2.f32 %v2190_v31  ;;  %v2366_v23 = vsub.f32 %v1784_v48, %v2307_v13  ;;  %v2369_v20 = vsub.f32 %v1786_v8, %v2314_v27 }
  0xb9   : > { %2864 = vst [vmem:[#allocation23_spill] sm:$0xff] %v2355_v56  ;;  %1501 = vmatpush3.msra.mxu1 %v550_v44  ;;  %1476 = vmatpush3.msra.mxu0 %v2355_v56  ;;  %v557_v29 = vand.u32 4294901760, %v556_v24  ;;  %v2802_v11 = vand.u32 4294901760, %v2361_v6  ;;  %1801 = vpow2.f32 %v2192_v32  ;;  %v2375_v61 = vsub.f32 %v1788_v26, %v2324_v16 }
  0xba   : > { %1502 = vmatprep.subr.mxu1 %v669_v41  ;;  %v2801_v3 = vand.u32 4294901760, %v2366_v23  ;;  %v2795_v31 = vand.u32 4294901760, %v2369_v20  ;;  %1803 = vpow2.f32 %v2195_v36  ;;  %v2381_v39 = vsub.f32 %v1790_v43, %v2334_v28 }
  0xbb   : > { %1503 = vmatpush3.msra.mxu1 %v557_v29  ;;  %v675_v48 = vsub.f32 %v2361_v6, %v2802_v11  ;;  %v2800_v32 = vand.u32 4294901760, %v2375_v61  ;;  %1805 = vpow2.f32 %v2197_v37  ;;  %v2389_v41 = vsub.f32 %v1792_v59, %v2341_v9 }
  0xbc   : > { %v563_v8 = vsub.f32 %v2366_v23, %v2801_v3  ;;  %v682_v36 = vsub.f32 %v2369_v20, %v2795_v31  ;;  %v2796_v26 = vand.u32 4294901760, %v2381_v39  ;;  %1807 = vpow2.f32 %v2199_v38 }
  0xbd   : > { %v676_v43 = vand.u32 4294901760, %v675_v48  ;;  %v570_v37 = vsub.f32 %v2375_v61, %v2800_v32  ;;  %v2799_v59 = vand.u32 4294901760, %v2389_v41  ;;  %1809 = vpow2.f32 %v2201_v40 }
  0xbe   : > { %v564_v44 = vand.u32 4294901760, %v563_v8  ;;  %v689_v24 = vsub.f32 %v2381_v39, %v2796_v26  ;;  %v2408_v29 = vsub.f32 %v1794_v14, %v2348_v33  ;;  %v328_v31 = vmul.f32 1.442695, %v2215_v51 }
  0xbf   : > { %1504 = vmatprep.subr.mxu1 %v676_v43  ;;  %v683_v38 = vand.u32 4294901760, %v682_v36  ;;  %v577_v48 = vsub.f32 %v2389_v41, %v2799_v59  ;;  %1811 = vpow2.f32 %v2207_v46  ;;  %v2416_v40 = vsub.f32 %v1796_v1, %v2355_v56 }
  0xc0   : > { %1505 = vmatpush3.msra.mxu1 %v564_v44  ;;  %v571_v8 = vand.u32 4294901760, %v570_v37  ;;  %v2798_v26 = vand.u32 4294901760, %v2408_v29  ;;  %1813 = vpow2.f32 %v2212_v50  ;;  %v690_v14 = vand.u32 4294901760, %v689_v24 }
  0xc1   : > { %1506 = vmatprep.subr.mxu1 %v683_v38  ;;  %v2797_v51 = vand.u32 4294901760, %v2416_v40  ;;  %1815 = vpow2.f32 %v2223_v55  ;;  %v578_v36 = vand.u32 4294901760, %v577_v48  ;;  %v2804_v43 = vand.u32 4294901760, %v2169_v42 }
  0xc2   : > { %1507 = vmatpush3.msra.mxu1 %v571_v8  ;;  %v696_v46 = vsub.f32 %v2408_v29, %v2798_v26  ;;  %1817 = vpow2.f32 %v2231_v17 }
  0xc3   : > { %v1798_v1 = vpop.eup %1797  ;;  %1508 = vmatprep.subr.mxu1 %v690_v14  ;;  %v584_v50 = vsub.f32 %v2416_v40, %v2797_v51  ;;  %1819 = vpow2.f32 %v328_v31  ;;  %v2443_v31 = vsub.f32 %v2169_v42, %v2804_v43 }
  0xc4   : > { %v2430_v37 = vand.u32 4294901760, %v1798_v1  ;;  %1509 = vmatpush3.msra.mxu1 %v578_v36  ;;  %v697_v55 = vand.u32 4294901760, %v696_v46 }
  0xc5   : > { %v1800_v44 = vpop.eup %1799  ;;  %v585_v24 = vand.u32 4294901760, %v584_v50  ;;  %v511_v43 = vand.u32 4294901760, %v2443_v31 }
  0xc6   : > { %2865 = vst [vmem:[#allocation24_spill] sm:$0xff] %v2430_v37  ;;  %v1802_v38 = vpop.eup %1801  ;;  %1477 = vmatprep.subr.mxu0 %v2430_v37  ;;  %v2433_v48 = vand.u32 4294901760, %v1800_v44  ;;  %1510 = vmatprep.subr.mxu1 %v697_v55  ;;  %v2436_v17 = vsub.f32 %v1798_v1, %v2430_v37 }
  0xc7   : > { %v1804_v8 = vpop.eup %1803  ;;  %v2438_v14 = vand.u32 4294901760, %v1802_v38  ;;  %1511 = vmatpush3.msra.mxu1 %v585_v24 }
  0xc8   : > { %2866 = vst [vmem:[#allocation25_spill] sm:$0xff] %v2433_v48  ;;  %v1806_v36 = vpop.eup %1805  ;;  %1478 = vmatpush3.msra.mxu0 %v2433_v48  ;;  %v2446_v46 = vand.u32 4294901760, %v1804_v8  ;;  %v2807_v50 = vand.u32 4294901760, %v2436_v17  ;;  %v2450_v55 = vsub.f32 %v1800_v44, %v2433_v48 }
  0xc9   : > { %2867 = vst [vmem:[#allocation26_spill] sm:$0xff] %v2438_v14  ;;  %v1808_v1 = vpop.eup %1807  ;;  %1479 = vmatprep.subr.mxu0 %v2438_v14  ;;  %v2453_v51 = vand.u32 4294901760, %v1806_v36  ;;  %v2456_v24 = vsub.f32 %v1802_v38, %v2438_v14 }
  0xca   : > { %2868 = vst [vmem:[#allocation27_spill] sm:$0xff] %v2446_v46  ;;  %v1810_v26 = vpop.eup %1809  ;;  %1480 = vmatpush3.msra.mxu0 %v2446_v46  ;;  %v2459_v59 = vand.u32 4294901760, %v1808_v1  ;;  %v703_v32 = vsub.f32 %v2436_v17, %v2807_v50  ;;  %v2816_v44 = vand.u32 4294901760, %v2450_v55  ;;  %v2466_v3 = vsub.f32 %v1804_v8, %v2446_v46 }
  0xcb   : > { %2869 = vst [vmem:[#allocation28_spill] sm:$0xff] %v2453_v51  ;;  %1481 = vmatprep.subr.mxu0 %v2453_v51  ;;  %v2469_v11 = vand.u32 4294901760, %v1810_v26  ;;  %v2825_v38 = vand.u32 4294901760, %v2456_v24  ;;  %v2473_v22 = vsub.f32 %v1806_v36, %v2453_v51 }
  0xcc   : > { %2870 = vst [vmem:[#allocation29_spill] sm:$0xff] %v2459_v59  ;;  %v1812_v42 = vpop.eup %1811  ;;  %1482 = vmatpush3.msra.mxu0 %v2459_v59  ;;  %v704_v50 = vand.u32 4294901760, %v703_v32  ;;  %v591_v8 = vsub.f32 %v2450_v55, %v2816_v44  ;;  %v2830_v46 = vand.u32 4294901760, %v2466_v3  ;;  %v2482_v14 = vsub.f32 %v1808_v1, %v2459_v59 }
  0xcd   : > { %2871 = vst [vmem:[#allocation30_spill] sm:$0xff] %v2469_v11  ;;  %2872 = vst [vmem:[#allocation31_spill] sm:$0xff] %v2473_v22  ;;  %v1814_v48 = vpop.eup %1813  ;;  %1483 = vmatprep.subr.mxu0 %v2469_v11  ;;  %v2485_v36 = vand.u32 4294901760, %v1812_v42  ;;  %v710_v31 = vsub.f32 %v2456_v24, %v2825_v38  ;;  %v2492_v51 = vsub.f32 %v1810_v26, %v2469_v11  ;;  %v2873_v26 = vand.u32 4294901760, %v2473_v22 }
  0xce   : > { %v1816_v44 = vpop.eup %1815  ;;  %v2494_v37 = vand.u32 4294901760, %v1814_v48  ;;  %1512 = vmatprep.subr.mxu1 %v704_v50  ;;  %v592_v1 = vand.u32 4294901760, %v591_v8  ;;  %v598_v59 = vsub.f32 %v2466_v3, %v2830_v46  ;;  %v2838_v56 = vand.u32 4294901760, %v2482_v14 }
  0xcf   : > { %v1818_v33 = vpop.eup %1817  ;;  %1484 = vmatpush3.msra.mxu0 %v2485_v36  ;;  %v2501_v38 = vand.u32 4294901760, %v1816_v44  ;;  %v711_v32 = vand.u32 4294901760, %v710_v31  ;;  %v717_v11 = vsub.f32 %v2473_v22, %v2873_v26  ;;  %v2837_v9 = vand.u32 4294901760, %v2492_v51 }
  0xd0   : > { %v1820_v50 = vpop.eup %1819  ;;  %1485 = vmatprep.subr.mxu0 %v2494_v37  ;;  %1513 = vmatpush3.msra.mxu1 %v592_v1  ;;  %v2508_v8 = vand.u32 4294901760, %v1818_v33  ;;  %v599_v46 = vand.u32 4294901760, %v598_v59  ;;  %v605_v28 = vsub.f32 %v2482_v14, %v2838_v56  ;;  %v2514_v16 = vsub.f32 %v1812_v42, %v2485_v36 }
  0xd1   : > { %1486 = vmatpush3.msra.mxu0 %v2501_v38  ;;  %1514 = vmatprep.subr.mxu1 %v711_v32  ;;  %v2517_v31 = vand.u32 4294901760, %v1820_v50  ;;  %v718_v26 = vand.u32 4294901760, %v717_v11  ;;  %v724_v1 = vsub.f32 %v2492_v51, %v2837_v9  ;;  %v2523_v22 = vsub.f32 %v1814_v48, %v2494_v37 }
  0xd2   : > { %1487 = vmatprep.subr.mxu0 %v2508_v8  ;;  %1515 = vmatpush3.msra.mxu1 %v599_v46  ;;  %v2843_v59 = vand.u32 4294901760, %v2514_v16  ;;  %v2528_v42 = vsub.f32 %v1816_v44, %v2501_v38  ;;  %v2531_v32 = vsub.f32 %v1818_v33, %v2508_v8  ;;  %v606_v11 = vand.u32 4294901760, %v605_v28 }
  0xd3   : > { %2874 = vst [vmem:[#allocation32_spill] sm:$0xff] %v2523_v22  ;;  %1488 = vmatpush3.msra.mxu0 %v2517_v31  ;;  %1516 = vmatprep.subr.mxu1 %v718_v26  ;;  %v2839_v9 = vand.u32 4294901760, %v2523_v22  ;;  %v2536_v48 = vsub.f32 %v1820_v50, %v2517_v31  ;;  %v725_v46 = vand.u32 4294901760, %v724_v1 }
  0xd4   : > { %2875 = vst [vmem:[#allocation33_spill] sm:$0xff] %v2528_v42  ;;  %1527 = vmatprep.subr.mxu0 %v2221_v54  ;;  %512 = vmatmul.mubr.f32.vlgmr.msra.gmra.mxu0 %v511_v43  ;;  %v612_v44 = vsub.f32 %v2514_v16, %v2843_v59  ;;  %v2842_v33 = vand.u32 4294901760, %v2528_v42  ;;  %v2840_v56 = vand.u32 4294901760, %v2531_v32  ;;  %v2887_v59 = vld [vmem:[#allocation17_spill] sm:$0xff] }
  0xd5   : > { %1517 = vmatpush3.msra.mxu1 %v606_v11  ;;  %1528 = vmatpush3.msra.mxu0 %v2229_v58  ;;  %v731_v28 = vsub.f32 %v2523_v22, %v2839_v9  ;;  %v2841_v50 = vand.u32 4294901760, %v2536_v48 }
  0xd6   : > { %1518 = vmatprep.subr.mxu1 %v725_v46  ;;  %1529 = vmatprep.subr.mxu0 %v2238_v62  ;;  %v613_v43 = vand.u32 4294901760, %v612_v44  ;;  %v619_v26 = vsub.f32 %v2528_v42, %v2842_v33  ;;  %v738_v1 = vsub.f32 %v2531_v32, %v2840_v56  ;;  %v2886_v33 = vld [vmem:[#allocation27_spill] sm:$0xff] }
  0xd7   : > { %1530 = vmatpush3.msra.mxu0 %v2245_v2  ;;  %v732_v11 = vand.u32 4294901760, %v731_v28  ;;  %v626_v9 = vsub.f32 %v2536_v48, %v2841_v50  ;;  %879 = vmatprep.mubr.f32.mxu0 %v2147_v4  ;;  %v2878_v28 = vld [vmem:[#allocation31_spill] sm:$0xff]  ;;  %v2885_v50 = vld [vmem:[#allocation26_spill] sm:$0xff] }
  0xd8   : > { %1519 = vmatpush3.msra.mxu1 %v613_v43  ;;  %1531 = vmatprep.subr.mxu0 %v2255_v10  ;;  %v620_v46 = vand.u32 4294901760, %v619_v26  ;;  %v739_v44 = vand.u32 4294901760, %v738_v1  ;;  %v2879_v43 = vld [vmem:[#allocation20_spill] sm:$0xff]  ;;  %v2880_v26 = vld [vmem:[#allocation21_spill] sm:$0xff]  ;;  %v2881_v1 = vld [vmem:[#allocation22_spill] sm:$0xff] }
  0xd9   : > { %1520 = vmatprep.subr.mxu1 %v732_v11  ;;  %1532 = vmatpush3.msra.mxu0 %v2265_v15  ;;  %v627_v56 = vand.u32 4294901760, %v626_v9  ;;  %v2876_v9 = vld [vmem:[#allocation18_spill] sm:$0xff]  ;;  %v2882_v11 = vld [vmem:[#allocation23_spill] sm:$0xff] }
  0xda   : > { %1521 = vmatpush3.msra.mxu1 %v620_v46  ;;  %1533 = vmatprep.subr.mxu0 %v2288_v35  ;;  %v2883_v46 = vld [vmem:[#allocation24_spill] sm:$0xff] }
  0xdb   : > { %1522 = vmatprep.subr.mxu1 %v739_v44  ;;  %1534 = vmatpush3.msra.mxu0 %v2297_v47  ;;  %v2884_v44 = vld [vmem:[#allocation25_spill] sm:$0xff] }
  0xdc   : > { %1523 = vmatpush3.msra.mxu1 %v627_v56  ;;  %1535 = vmatprep.subr.mxu0 %v2304_v63  ;;  %v2877_v56 = vld [vmem:[#allocation19_spill] sm:$0xff] }
  0xdd   : > { %744 = vmatmul.mubr.f32.vlgmr.msra.gmra.mxu1 %v2156_v19  ;;  %1562 = vmatprep.subr.mxu1 %v2205_v45  ;;  %v2888_v19 = vld [vmem:[#allocation28_spill] sm:$0xff] }
  0xde   : > { %1536 = vmatpush3.msra.mxu0 %v2311_v21  ;;  %1563 = vmatpush3.msra.mxu1 %v2210_v49 }
  0xdf   : > { %1537 = vmatprep.subr.mxu0 %v2321_v34  ;;  %1564 = vmatprep.subr.mxu1 %v2218_v53 }
  0xe0   : > { %1538 = vmatpush3.msra.mxu0 %v2331_v5  ;;  %1565 = vmatpush3.msra.mxu1 %v2226_v57 }
  0xe1   : > { %1539 = vmatprep.subr.mxu0 %v2361_v6  ;;  %1566 = vmatprep.subr.mxu1 %v2234_v60 }
  0xe2   : > { %1540 = vmatpush3.msra.mxu0 %v2366_v23  ;;  %1567 = vmatpush3.msra.mxu1 %v2241_v0 }
  0xe3   : > { %1541 = vmatprep.subr.mxu0 %v2369_v20  ;;  %1568 = vmatprep.subr.mxu1 %v2248_v7 }
  0xe4   : > { %1542 = vmatpush3.msra.mxu0 %v2375_v61  ;;  %1569 = vmatpush3.msra.mxu1 %v2258_v12 }
  0xe5   : > { %1543 = vmatprep.subr.mxu0 %v2381_v39  ;;  %1570 = vmatprep.subr.mxu1 %v2268_v18 }
  0xe6   : > { %1544 = vmatpush3.msra.mxu0 %v2389_v41  ;;  %1571 = vmatpush3.msra.mxu1 %v2275_v25 }
  0xe7   : > { %1545 = vmatprep.subr.mxu0 %v2408_v29  ;;  %1572 = vmatprep.subr.mxu1 %v2282_v30 }
  0xe8   : > { %1546 = vmatpush3.msra.mxu0 %v2416_v40  ;;  %1573 = vmatpush3.msra.mxu1 %v2876_v9 }
  0xe9   : > { %1547 = vmatprep.subr.mxu0 %v2436_v17  ;;  %1574 = vmatprep.subr.mxu1 %v2300_v52 }
  0xea   : > { %1548 = vmatpush3.msra.mxu0 %v2450_v55  ;;  %1575 = vmatpush3.msra.mxu1 %v2307_v13 }
  0xeb   : > { %1549 = vmatprep.subr.mxu0 %v2456_v24  ;;  %1576 = vmatprep.subr.mxu1 %v2314_v27 }
  0xec   : > { %1550 = vmatpush3.msra.mxu0 %v2466_v3  ;;  %1577 = vmatpush3.msra.mxu1 %v2877_v56 }
  0xed   : > { %1551 = vmatprep.subr.mxu0 %v2878_v28  ;;  %1578 = vmatprep.subr.mxu1 %v2879_v43 }
  0xee   : > { %1552 = vmatpush3.msra.mxu0 %v2482_v14  ;;  %1579 = vmatpush3.msra.mxu1 %v2880_v26 }
  0xef   : > { %1553 = vmatprep.subr.mxu0 %v2492_v51  ;;  %1580 = vmatprep.subr.mxu1 %v2881_v1 }
  0xf0   : > { %1554 = vmatpush3.msra.mxu0 %v2514_v16  ;;  %1581 = vmatpush3.msra.mxu1 %v2882_v11 }
  0xf1   : > { %1555 = vmatprep.subr.mxu0 %v2523_v22  ;;  %1582 = vmatprep.subr.mxu1 %v2883_v46  ;;  %v2889_v22 = vand.u32 4294901760, %v2221_v54  ;;  %v2890_v46 = vld [vmem:[#allocation29_spill] sm:$0xff]  ;;  %v2895_v54 = vand.u32 4294901760, %v2255_v10  ;;  %v2900_v10 = vand.u32 4294901760, %v2887_v59 }
  0xf2   : > { %1556 = vmatpush3.msra.mxu0 %v2528_v42  ;;  %1583 = vmatpush3.msra.mxu1 %v2884_v44  ;;  %v2891_v42 = vand.u32 4294901760, %v2229_v58  ;;  %v2892_v44 = vld [vmem:[#allocation30_spill] sm:$0xff]  ;;  %v2896_v58 = vand.u32 4294901760, %v2265_v15  ;;  %v2902_v15 = vand.u32 4294901760, %v2311_v21  ;;  %v2921_v21 = vld [vmem:[#allocation32_spill] sm:$0xff] }
  0xf3   : > { %1557 = vmatprep.subr.mxu0 %v2531_v32  ;;  %1584 = vmatprep.subr.mxu1 %v2885_v50  ;;  %v2893_v50 = vand.u32 4294901760, %v2238_v62  ;;  %v2897_v62 = vand.u32 4294901760, %v2288_v35  ;;  %v2903_v35 = vand.u32 4294901760, %v2321_v34  ;;  %v2923_v34 = vld [vmem:[#allocation24_spill] sm:$0xff] }
  0xf4   : > { %1558 = vmatpush3.msra.mxu0 %v2536_v48  ;;  %1585 = vmatpush3.msra.mxu1 %v2886_v33  ;;  %v2894_v33 = vand.u32 4294901760, %v2245_v2  ;;  %v2898_v2 = vand.u32 4294901760, %v2147_v4  ;;  %v2904_v4 = vand.u32 4294901760, %v2331_v5  ;;  %v2908_v5 = vand.u32 4294901760, %v2375_v61 }
  0xf5   : > { %882 = vmatmul.mubr.f32.vlgmr.msra.gmra.mxu0 %v2887_v59  ;;  %1586 = vmatprep.subr.mxu1 %v2888_v19  ;;  %v2927_v61 = vand.u32 4294901760, %v2531_v32 }
  0xf6   : > { %1597 = vmatprep.subr.mxu0 %v2889_v22  ;;  %1587 = vmatpush3.msra.mxu1 %v2890_v46  ;;  %v2899_v22 = vand.u32 4294901760, %v2297_v47  ;;  %v2905_v47 = vand.u32 4294901760, %v2361_v6  ;;  %v2924_v6 = vld [vmem:[#allocation33_spill] sm:$0xff] }
  0xf7   : > { %1598 = vmatpush3.msra.mxu0 %v2891_v42  ;;  %1588 = vmatprep.subr.mxu1 %v2892_v44  ;;  %v2901_v42 = vand.u32 4294901760, %v2304_v63  ;;  %v2919_v63 = vand.u32 4294901760, %v2492_v51 }
  0xf8   : > { %1599 = vmatprep.subr.mxu0 %v2893_v50  ;;  %1589 = vmatpush3.msra.mxu1 %v2485_v36 }
  0xf9   : > { %1600 = vmatpush3.msra.mxu0 %v2894_v33  ;;  %1590 = vmatprep.subr.mxu1 %v2494_v37 }
  0xfa   : > { %1601 = vmatprep.subr.mxu0 %v2895_v54  ;;  %1591 = vmatpush3.msra.mxu1 %v2501_v38 }
  0xfb   : > { %1602 = vmatpush3.msra.mxu0 %v2896_v58  ;;  %1592 = vmatprep.subr.mxu1 %v2508_v8 }
  0xfc   : > { %1603 = vmatprep.subr.mxu0 %v2897_v62  ;;  %1593 = vmatpush3.msra.mxu1 %v2517_v31 }
  0xfd   : > { %986 = vmatprep.mubr.f32.mxu1 %v2898_v2  ;;  %1604 = vmatpush3.msra.mxu0 %v2899_v22 }
  0xfe   : > { %990 = vmatmul.mubr.f32.vlgmr.msra.gmra.mxu1 %v2900_v10  ;;  %1605 = vmatprep.subr.mxu0 %v2901_v42 }
  0xff   : > { %1632 = vmatprep.subr.mxu1 %v2205_v45  ;;  %1606 = vmatpush3.msra.mxu0 %v2902_v15  ;;  %v2906_v45 = vand.u32 4294901760, %v2366_v23  ;;  %v2925_v23 = vand.u32 4294901760, %v2924_v6 }
 0x100   : > { %1633 = vmatpush3.msra.mxu1 %v2210_v49  ;;  %1607 = vmatprep.subr.mxu0 %v2903_v35  ;;  %v2907_v49 = vand.u32 4294901760, %v2369_v20  ;;  %v2926_v20 = vld [vmem:[#allocation25_spill] sm:$0xff] }
 0x101   : > { %1634 = vmatprep.subr.mxu1 %v2218_v53  ;;  %1608 = vmatpush3.msra.mxu0 %v2904_v4  ;;  %v2909_v53 = vand.u32 4294901760, %v2381_v39  ;;  %v2930_v39 = vld [vmem:[#allocation15_spill] sm:$0xff] }
 0x102   : > { %1635 = vmatpush3.msra.mxu1 %v2226_v57  ;;  %1609 = vmatprep.subr.mxu0 %v2905_v47  ;;  %v2910_v57 = vand.u32 4294901760, %v2389_v41  ;;  %v2931_v41 = vld [vmem:[#allocation27_spill] sm:$0xff] }
 0x103   : > { %1636 = vmatprep.subr.mxu1 %v2234_v60  ;;  %1610 = vmatpush3.msra.mxu0 %v2906_v45  ;;  %v2911_v60 = vand.u32 4294901760, %v2408_v29  ;;  %v2932_v29 = vld [vmem:[#allocation16_spill] sm:$0xff] }
 0x104   : > { %1637 = vmatpush3.msra.mxu1 %v2241_v0  ;;  %1611 = vmatprep.subr.mxu0 %v2907_v49  ;;  %v2912_v0 = vand.u32 4294901760, %v2416_v40  ;;  %v1989_v40 = vmov 0.0  }
 0x105   : > { %1638 = vmatprep.subr.mxu1 %v2248_v7  ;;  %1612 = vmatpush3.msra.mxu0 %v2908_v5  ;;  %v2913_v7 = vand.u32 4294901760, %v2436_v17  ;;  %256 = vst [vmem:[#allocation2] sm:$0x3] %v1989_v40 }
 0x106   : > { %1639 = vmatpush3.msra.mxu1 %v2258_v12  ;;  %1613 = vmatprep.subr.mxu0 %v2909_v53  ;;  %v2914_v12 = vand.u32 4294901760, %v2450_v55 }
 0x107   : > { %1640 = vmatprep.subr.mxu1 %v2268_v18  ;;  %1614 = vmatpush3.msra.mxu0 %v2910_v57  ;;  %v2915_v18 = vand.u32 4294901760, %v2456_v24 }
 0x108   : > { %1641 = vmatpush3.msra.mxu1 %v2275_v25  ;;  %1615 = vmatprep.subr.mxu0 %v2911_v60  ;;  %v2916_v25 = vand.u32 4294901760, %v2466_v3  ;;  %v2928_v3 = vld [vmem:[#allocation26_spill] sm:$0xff] }
 0x109   : > { %1642 = vmatprep.subr.mxu1 %v2282_v30  ;;  %1616 = vmatpush3.msra.mxu0 %v2912_v0  ;;  %v2917_v30 = vand.u32 4294901760, %v2878_v28 }
 0x10a   : > { %1643 = vmatpush3.msra.mxu1 %v2876_v9  ;;  %1617 = vmatprep.subr.mxu0 %v2913_v7 }
 0x10b   : > { %1644 = vmatprep.subr.mxu1 %v2300_v52  ;;  %1618 = vmatpush3.msra.mxu0 %v2914_v12  ;;  %v2918_v52 = vand.u32 4294901760, %v2482_v14 }
 0x10c   : > { %1645 = vmatpush3.msra.mxu1 %v2307_v13  ;;  %1619 = vmatprep.subr.mxu0 %v2915_v18  ;;  %v2920_v13 = vand.u32 4294901760, %v2514_v16  ;;  %v2929_v16 = vand.u32 4294901760, %v2536_v48 }
 0x10d   : > { %1646 = vmatprep.subr.mxu1 %v2314_v27  ;;  %1620 = vmatpush3.msra.mxu0 %v2916_v25  ;;  %v2922_v27 = vand.u32 4294901760, %v2921_v21 }
 0x10e   : > { %1647 = vmatpush3.msra.mxu1 %v2877_v56  ;;  %1621 = vmatprep.subr.mxu0 %v2917_v30 }
 0x10f   : > { %1648 = vmatprep.subr.mxu1 %v2879_v43  ;;  %1622 = vmatpush3.msra.mxu0 %v2918_v52 }
 0x110   : > { %1649 = vmatpush3.msra.mxu1 %v2880_v26  ;;  %1623 = vmatprep.subr.mxu0 %v2919_v63 }
 0x111   : > { %1650 = vmatprep.subr.mxu1 %v2881_v1  ;;  %1624 = vmatpush3.msra.mxu0 %v2920_v13 }
 0x112   : > { %1651 = vmatpush3.msra.mxu1 %v2882_v11  ;;  %1625 = vmatprep.subr.mxu0 %v2922_v27  ;;  %v392_v11 = vld [vmem:[#allocation2] sm:$0x3] }
 0x113   : > { %1652 = vmatprep.subr.mxu1 %v2923_v34  ;;  %1626 = vmatpush3.msra.mxu0 %v2925_v23 }
 0x114   : > { %1653 = vmatpush3.msra.mxu1 %v2926_v20  ;;  %1627 = vmatprep.subr.mxu0 %v2927_v61 }
 0x115   : > { %1654 = vmatprep.subr.mxu1 %v2928_v3  ;;  %1628 = vmatpush3.msra.mxu0 %v2929_v16 }
 0x116   : > { %1156 = vmatprep.mubr.f32.mxu0 %v2930_v39  ;;  %1655 = vmatpush3.msra.mxu1 %v2931_v41 }
 0x117   : > { %1158 = vmatmul.mubr.f32.vlgmr.msra.gmra.mxu0 %v2932_v29  ;;  %1656 = vmatprep.subr.mxu1 %v2888_v19 }
 0x118   : > { %1657 = vmatpush3.msra.mxu1 %v2890_v46  ;;  %1260 = vmatprep.mubr.f32.mxu1 %v2930_v39 }
 0x119   : > { %1658 = vmatprep.subr.mxu1 %v2892_v44 }
 0x11a   : > { %1659 = vmatpush3.msra.mxu1 %v2485_v36 }
 0x11b   : > { %1660 = vmatprep.subr.mxu1 %v2494_v37 }
 0x11c   : > { %1661 = vmatpush3.msra.mxu1 %v2501_v38 }
 0x11d   : > { %1662 = vmatprep.subr.mxu1 %v2508_v8 }
 0x11e   : > { %1663 = vmatpush3.msra.mxu1 %v2517_v31 }
 0x11f   : > { %1262 = vmatmul.mubr.f32.vlgmr.msra.gmra.mxu1 %v2932_v29 }
 0x194   : > { %v1489_v19 = vpop.f32.mrf.mxu0 }
 0x196   : > { %v1490_v51 = vpop.f32.mrf.mxu0 }
 0x197   : > { %v1491_v48 = vadd.f32 %v1490_v51, %v1489_v19 }
 0x19d   : > { %v1524_v17 = vpop.f32.mrf.mxu1 }
 0x19f   : > { %v1525_v55 = vpop.f32.mrf.mxu1 }
 0x1a0   : > { %v1526_v32 = vadd.f32 %v1525_v55, %v1524_v17 }
 0x1a2   : > { %v746_v33 = vadd.f32 %v1526_v32, %v1491_v48 }
 0x1b5   : > { %v1559_v14 = vpop.f32.mrf.mxu0 }
 0x1b7   : > { %v1560_v24 = vpop.f32.mrf.mxu0 }
 0x1b8   : > { %v1561_v38 = vadd.f32 %v1560_v24, %v1559_v14 }
 0x1ba   : > { %v884_v50 = vadd.f32 %v1561_v38, %v746_v33 }
 0x1be   : > { %v1594_v59 = vpop.f32.mrf.mxu1 }
 0x1c0   : > { %v1595_v37 = vpop.f32.mrf.mxu1 }
 0x1c1   : > { %v1596_v31 = vadd.f32 %v1595_v37, %v1594_v59 }
 0x1c3   : > { %v992_v28 = vadd.f32 %v1596_v31, %v884_v50 }
 0x1d7   : > { %v1629_v36 = vpop.f32.mrf.mxu0 }
 0x1d9   : > { %v1630_v8 = vpop.f32.mrf.mxu0 }
 0x1da   : > { %v1631_v9 = vadd.f32 %v1630_v8, %v1629_v36 }
 0x1dc   : > { %v1160_v26 = vadd.f32 %v1631_v9, %v992_v28 }
 0x1df   : > { %v1664_v56 = vpop.f32.mrf.mxu1 }
 0x1e1   : > { %v1665_v43 = vpop.f32.mrf.mxu1 }
 0x1e2   : > { %v1666_v1 = vadd.f32 %v1665_v43, %v1664_v56 }
 0x1e4   : > { %v1264_v46 = vadd.f32 %v1666_v1, %v1160_v26 }
 0x1e6   : > { %v1267_v44 = vadd.f32 %v1264_v46, %v392_v11 }
 0x1e8   : > { %1268 = vst [vmem:[#allocation2] sm:$0x3] %v1267_v44 }
 0x1eb   : > { %1276 = sbr.rel (%p1449_p1) target bundleno = 533 (0x215), region = 56 }
 0x1ef   : > { %v1272_v54 = vld [vmem:[#allocation2] sm:$0x3] }
 0x1f0   : > { %v1450_v58 = vmul.f32 -1.442695, %v1272_v54 }
 0x1f2   : > { %1821 = vpow2.f32 %v1450_v58 }
 0x1ff   : > { %v1822_v62 = vpop.eup %1821 }
 0x200   : > { %v1280_v2 = vadd.f32 1.0, %v1822_v62 }
 0x202   : > { %1823 = vrcp.f32 %v1280_v2 }
 0x20f   : > { %v1824_v22 = vpop.eup %1823 }
 0x210   : > { %v1283_v10 = vmax.f32 %v1824_v22, 1e-05 }
 0x212   : > { %v1284_v42 = vmin.f32 %v1283_v10, 0.99999 }
 0x214   : > { %1285 = vst [vmem:[%s2729_s4] sm:$0x3] %v1284_v42 }
 0x215 PF: > { %p1451_p4 = scmp.eq.s32.totalorder %s1974_s15, 0 }
 0x217   : > { %1289 = sbr.rel (%p1451_p4) target bundleno = 585 (0x249), region = 60 }
 0x21c   : > { %v1290_v15 = vmul.f32 1.442695, %v1272_v54 }
 0x21e   : > { %1825 = vpow2.f32 %v1290_v15 }
 0x22b   : > { %v1826_v35 = vpop.eup %1825 }
 0x22c   : > { %v1293_v4 = vadd.f32 1.0, %v1826_v35  ;;  %v1296_v47 = vmul.f32 -0.5, %v1826_v35  ;;  %v1299_v49 = vand.u32 2147483647, %v1826_v35  ;;  %vm1292_vm1 = vcmp.lt.f32.partialorder %v1826_v35, 1000.0 }
 0x22e   : > { %1827 = vlog2.f32 %v1293_v4  ;;  %v1297_v45 = vadd.f32 1.0, %v1296_v47  ;;  %vm1300_vm0 = vcmp.lt.f32.partialorder %v1299_v49, 0.0004427343 }
 0x230   : > { %v1298_v5 = vmul.f32 %v1826_v35, %v1297_v45 }
 0x23b   : > { %v1828_v53 = vpop.eup %1827 }
 0x23c   : > { %v1295_v57 = vmul.f32 0.6931472, %v1828_v53 }
 0x23e   : > { %v1301_v60 = vsel %vm1300_vm0, %v1298_v5, %v1295_v57 }
 0x23f   : > { %v1302_v0 = vsel %vm1292_vm1, %v1301_v60, %v1272_v54 }
 0x240   : > { %v1303_v7 = vmul.f32 0.9, %v1302_v0 }
 0x242   : > { %v1304_v12 = vadd.f32 0.01, %v1303_v7 }
 0x244   : > { %v1305_v18 = vmax.f32 %v1304_v12, 1e-05 }
 0x246   : > { %v1306_v25 = vmin.f32 %v1305_v18, 100000.0 }
 0x248   : > { %1307 = vst [vmem:[%s2729_s4] sm:$0x3] %v1306_v25 }
 0x249 PF: > { %s1453_s5 = sshll.u32 %s1974_s15, 5  ;;  %s1323_s8 = sshll.u32 %s2729_s4, 4  ;;  %s1324_s8 = int_to_ptr.vmem [resolvable:$true] %s1323_s8 }
 0x24a   : > { %s1321_s7 = scalar_lea.hbm %s2778_s3, %s1453_s5  ;;  %s1309_s10 = scalar_lea.sflag [#allocation5], %s2130_s19 }
 0x24b   : > { %s1894_s18 = scalar_lea.vmem %s1324_s8, 32  ;;  %s1990_s25 = smov [#allocation10]  }
 0x24c   : > { %p1895_p6 = scmp.ne.s32.totalorder %s1324_s8, %s1894_s18  ;;  %s1898_s26 = sshll.u32 %s1990_s25, 4  ;;  %s1899_s26 = int_to_ptr.vmem [resolvable:$false] %s1898_s26 }
 0x24d   : > { %s1900_s28 = scalar_lea.vmem %s1899_s26, 64  ;;  %p1901_p10 = scmp.lt.s32.totalorder %s1324_s8, %s1899_s26 }
 0x24e   : > { %p1896_p8 = pnand %p1895_p6, %p2099_p5  ;;  %p1902_p2 = scmp.lt.s32.totalorder %s1900_s28, %s1894_s18 }
 0x250   : > { %p1897_p3 = pneg %p1896_p8  ;;  %p1903_p9 = por %p1902_p2, %p1901_p10 }
 0x252   : > { %p1904_p11 = pnand %p1903_p9, %p1897_p3 }
 0x254   : > { %1907 = shalt.err (!%p1904_p11)
}
 0x255   : > { %s1908_s15 = scalar_lea.hbm %s1321_s7, 32  ;;  %s1912_s29 = scalar_lea.hbm %s2778_s3, 96 }
 0x256   : > { %p1909_p12 = scmp.ne.s32.totalorder %s1321_s7, %s1908_s15  ;;  %p1913_p0 = scmp.lt.s32.totalorder %s1321_s7, %s2778_s3 }
 0x257   : > { %p1914_p1 = scmp.lt.s32.totalorder %s1912_s29, %s1908_s15 }
 0x258   : > { %p1910_p13 = pnand %p1909_p12, %p2099_p5 }
 0x259   : > { %p1915_p4 = por %p1914_p1, %p1913_p0 }
 0x25a   : > { %p1911_p7 = pneg %p1910_p13 }
 0x25c   : > { %p1916_p6 = pnand %p1915_p4, %p1911_p7 }
 0x25e   : > { %1919 = shalt.err (!%p1916_p6)
}
 0x25f   : > { %1679 = dma.vmem_to_hbm [thread:$0]  (%p2099_p5), %s1324_s8, 32, %s1321_s7, %s1309_s10  }
 0x260 PF: > { %p1701_p8 = scmp.ge.s32.totalorder %s1982_s17, 2  ;;  %s1335_s22 = sand.u32 1, %s1962_s12  }
 0x261   : > { %p2933_p3 = scmp.ne.s32.totalorder %s2851_s23, 0  ;;  %s1336_s4 = scalar_lea.sflag [#allocation5], %s1335_s22 }
 0x263   : > { %p1693_p10 = pnand %p1701_p8, %p2933_p3 }
 0x265   : > { %p1694_p2 = pneg %p1693_p10 }
 0x267   : > { %1957 = dma.done.wait (%p1694_p2), %s1336_s4, 32  }
 0x268   : > { %1959 = vsyncadd (%p1694_p2), %s1336_s4, 4294967264  ;;  %s21_s17 = sadd.s32 1, %s1982_s17   ;;  %s2934_s12 = smov %s1966_s13 }
 0x269   : > { %p18_p9 = scmp.ge.s32.totalorder %s21_s17, 5   ;;  %s2935_s13 = smov %s1970_s14 }
 0x26a   : > { %s2936_s14 = smov %s2108_s27  ;;  %s2937_s15 = smov %s1978_s16 }
 0x26b   : > { %s2938_s16 = smov %s2940_s9  ;;  %20 = sbr.rel (!%p18_p9) target bundleno = 8 (0x8), region = 103 }
 0x270   :  { %1341 = vsyncpa [#allocation4], 1 }
 0x271   :  { %1343 = vsyncpa [#allocation4 + $0x1], 1 }
 0x272   :  { %1344 = vsyncpa [#allocation9], 1 }
 0x273   :  { %1345 = vsyncpa [#allocation5], 1 }
 0x274   :  { %1347 = vsyncpa [#allocation5 + $0x1], 1 }
 0x275   :  { %1348 = vsyncpa [#allocation6], 1 }
 0x276   :  { %1350 = vsyncpa [#allocation6 + $0x1], 1 }

</bundles_post_ra>
